<compile_context>
chip_gen: v5e
topology: v5e:2x2
jax: 0.10.0
libtpu: 0.0.40
codegen_flags: <defaults>
</compile_context>

<pallas_src>
import jax
import jax.numpy as jnp
from jax.experimental import pallas as pl

BN_EPS = 1e-5
LANES = 128
EMB_DIM = 384
H1 = 128
H2 = 64
W_SLAB_ROWS = EMB_DIM + LANES + LANES   # 640


def _bn_relu_train(h, gamma, beta):
    """Train-mode BatchNorm1d (biased batch stats), single pass, folded affine, + ReLU.

    h: [B, F] f32; gamma/beta: [1, F] f32.  Padded (gamma=beta=0) lanes stay 0.
    """
    m = jnp.mean(h, axis=0, keepdims=True)
    v = jnp.maximum(jnp.mean(h * h, axis=0, keepdims=True) - m * m, 0.0)
    scale = gamma * jax.lax.rsqrt(v + BN_EPS)
    shift = beta - m * scale
    return jnp.maximum(h * scale + shift, 0.0)


def deepset_kernel(emb_ref, w_ref, vec_ref, o_ref):
    # --- aggregate in f32, cast the MXU operand to bf16 ---
    x = (emb_ref[0] + emb_ref[1]).astype(jnp.bfloat16)            # [B, 384]

    # Packed small vectors: one [8,128] f32 block, one row per vector.
    vec = vec_ref[...]
    g1, be1 = vec[0:1], vec[1:2]
    g2, be2 = vec[2:3], vec[3:4]
    b3 = vec[4:5]

    # Static, 128-lane-wide, sublane-aligned views into the bf16 weight slab.
    w1 = w_ref[0:EMB_DIM, :]                                      # [384, 128]
    w2 = w_ref[EMB_DIM:EMB_DIM + LANES, :]                        # [128, 128]
    w3 = w_ref[EMB_DIM + LANES:W_SLAB_ROWS, :]                    # [128, 128]

    # --- rho layer 1: Linear(384,128) + BN + ReLU (pre-BN bias is dead) ---
    h = jnp.dot(x, w1, preferred_element_type=jnp.float32)
    h = _bn_relu_train(h, g1, be1)                                # [B, 128] f32

    # --- rho layer 2: Linear(128,64) padded to 128 lanes + BN + ReLU ---
    # Padded columns are exactly zero through the whole chain (zero weights,
    # zero gamma/beta), so BN over them stays zero.
    h = jnp.dot(h.astype(jnp.bfloat16), w2, preferred_element_type=jnp.float32)
    h = _bn_relu_train(h, g2, be2)                                # [B, 128] f32

    # --- rho layer 3: Linear(64,4) padded to 128 lanes; lane-dense store ---
    o_ref[...] = jnp.dot(h.astype(jnp.bfloat16), w3,
                         preferred_element_type=jnp.float32) + b3


def _full_vmem_spec(shape):
    zeros = (0,) * len(shape)          # bound per call -> no late-binding issue
    return pl.BlockSpec(shape, lambda: zeros)


def _pad2(a, rows, cols):
    a = jnp.asarray(a, jnp.float32)
    return jnp.pad(a, ((0, rows - a.shape[0]), (0, cols - a.shape[1])))


def _row(v, width=LANES):
    v = jnp.asarray(v, jnp.float32).reshape(1, -1)
    return jnp.pad(v, ((0, 0), (0, width - v.shape[1])))


def pack_params(params):
    """One-time packing of all rho parameters into two kernel inputs.

    Returns:
      w_slab: [640, 128] bf16  (w1 | w2 padded | w3 padded, stacked on rows)
      vec:    [8, 128]  f32    (g1, be1, g2, be2, b3, zeros...)
    Call once at init; do NOT call per forward.
    """
    w1 = _pad2(params["w1"], EMB_DIM, LANES)                      # [384, 128]
    w2 = _pad2(params["w2"], LANES, LANES)                        # [128, 128]
    w3 = _pad2(params["w3"], LANES, LANES)                        # [128, 128]
    w_slab = jnp.concatenate([w1, w2, w3], axis=0).astype(jnp.bfloat16)

    vec = jnp.concatenate(
        [_row(params["g1"]), _row(params["be1"]),
         _row(params["g2"]), _row(params["be2"]),
         _row(params["b3"]),
         jnp.zeros((3, LANES), jnp.float32)],
        axis=0)                                                   # [8, 128]
    return w_slab, vec


def deepset_forward_padded(emb_stacked, w_slab, vec):
    """emb_stacked: [2, B, 384] f32; w_slab/vec from pack_params().

    Returns the lane-dense padded output [B, 128] f32 (logits in lanes 0:4).
    """
    B = emb_stacked.shape[1]

    args = (emb_stacked, w_slab, vec)
    in_specs = [_full_vmem_spec(a.shape) for a in args]
    out_spec = pl.BlockSpec((B, LANES), lambda: (0, 0))

    flops = 2 * B * (EMB_DIM * H1 + H1 * LANES + LANES * LANES)
    bytes_accessed = (emb_stacked.size * 4 + w_slab.size * 2
                      + vec.size * 4 + B * LANES * 4)

    # Everything fits comfortably in VMEM (<1 MiB) -> single grid point; the
    # default scoped VMEM limit is plenty on all generations.  If B ever grows
    # to O(1K+), add a "parallel" batch grid axis (2x on v7x's dual TCs) and
    # switch BN to running stats / a two-pass batch-stats scheme.
    return pl.pallas_call(
        deepset_kernel,
        out_shape=jax.ShapeDtypeStruct((B, LANES), jnp.float32),
        grid=(),
        in_specs=in_specs,
        out_specs=out_spec,
        cost_estimate=pl.CostEstimate(
            flops=flops, transcendentals=2 * LANES,
            bytes_accessed=bytes_accessed),
    )(*args)


def deepset_forward(emb_stacked, w_slab, vec, out_dim=4):
    """Convenience wrapper returning [B, out_dim].  If the consumer can take
    the padded [B, 128] slab, call deepset_forward_padded and defer the slice."""
    return deepset_forward_padded(emb_stacked, w_slab, vec)[:, :out_dim]


def init_params(key, embedding_dim=EMB_DIM, output_dim=4):
    ks = jax.random.split(key, 6)
    scale = 0.05

    def lin(k, din, dout):
        kw, kb = jax.random.split(k)
        w = jax.random.normal(kw, (din, dout), jnp.float32) * scale
        b = jax.random.normal(kb, (1, dout), jnp.float32) * scale
        return w, b

    w1, b1 = lin(ks[0], embedding_dim, H1)
    w2, b2 = lin(ks[1], H1, H2)
    w3, b3 = lin(ks[2], H2, output_dim)
    # BatchNorm affine params (fresh module: gamma=1, beta=0) — perturbed
    # slightly but deterministically so the affine path is exercised.
    g1 = 1.0 + 0.01 * jax.random.normal(ks[3], (1, H1), jnp.float32)
    be1 = 0.01 * jax.random.normal(ks[3], (1, H1), jnp.float32)
    g2 = 1.0 + 0.01 * jax.random.normal(ks[4], (1, H2), jnp.float32)
    be2 = 0.01 * jax.random.normal(ks[4], (1, H2), jnp.float32)
    return dict(w1=w1, b1=b1, g1=g1, be1=be1,
                w2=w2, b2=b2, g2=g2, be2=be2,
                w3=w3, b3=b3)


def _batchnorm_ref(h, gamma, beta):
    # PyTorch BatchNorm1d training mode: biased batch variance (two-pass form).
    mean = jnp.mean(h, axis=0, keepdims=True)
    var = jnp.mean((h - mean) * (h - mean), axis=0, keepdims=True)
    return (h - mean) * jax.lax.rsqrt(var + BN_EPS) * gamma + beta


def reference_forward(emb1, emb2, p):
    """Pure-JAX reference with full PyTorch semantics (pre-BN biases kept,
    two-pass batch stats) and the same bf16-MXU-operand convention."""
    bf16 = jnp.bfloat16
    x = emb1 + emb2
    h = jnp.dot(x.astype(bf16), p["w1"].astype(bf16),
                preferred_element_type=jnp.float32) + p["b1"]
    h = jnp.maximum(_batchnorm_ref(h, p["g1"], p["be1"]), 0.0)
    h = jnp.dot(h.astype(bf16), p["w2"].astype(bf16),
                preferred_element_type=jnp.float32) + p["b2"]
    h = jnp.maximum(_batchnorm_ref(h, p["g2"], p["be2"]), 0.0)
    return jnp.dot(h.astype(bf16), p["w3"].astype(bf16),
                   preferred_element_type=jnp.float32) + p["b3"]


if __name__ == "__main__":
    key = jax.random.PRNGKey(0)
    k_e1, k_e2, k_p = jax.random.split(key, 3)

    B, OUT_DIM = 16, 4  # ChemBerta batch of 16 pairs, 384-dim embeddings
    emb1 = jax.random.normal(k_e1, (B, EMB_DIM), jnp.float32)
    emb2 = jax.random.normal(k_e2, (B, EMB_DIM), jnp.float32)
    params = init_params(k_p, EMB_DIM, OUT_DIM)

    # One-time packing (outside the per-call path); the upstream encoder can
    # emit the stacked embedding layout directly.
    w_slab, vec = pack_params(params)
    emb_stacked = jnp.stack([emb1, emb2], axis=0)                 # [2, B, 384]

    out = jax.block_until_ready(deepset_forward(emb_stacked, w_slab, vec, OUT_DIM))
    ref = reference_forward(emb1, emb2, params)

    assert out.shape == (B, OUT_DIM)
    # 1e-3 tolerance covers single-pass vs two-pass BN stats, the exact
    # (mean-cancelled) removal of b1/b2, and bf16 MXU rounding.
    assert jnp.allclose(out, ref, atol=1e-3, rtol=1e-3), "mismatch vs pure-JAX reference"
    print("KERNEL_OK")
</pallas_src>

<mosaic_0001>
module attributes {stable_mosaic.version = 11 : i64} {
  func.func @deepset_kernel(%arg0: memref<2x16x384xf32, #tpu.memory_space<vmem>>, %arg1: memref<640x128xbf16, #tpu.memory_space<vmem>>, %arg2: memref<8x128xf32, #tpu.memory_space<vmem>>, %arg3: memref<16x128xf32, #tpu.memory_space<vmem>>) attributes {dimension_semantics = [], scalar_prefetch = 0 : i64, scratch_operands = 0 : i64, tpu.core_type = #tpu.core_type<tc>} {
    %c0 = arith.constant 0 : index
    %c0_0 = arith.constant 0 : index
    %c0_1 = arith.constant 0 : index
    %0 = vector.load %arg0[%c0, %c0_0, %c0_1] : memref<2x16x384xf32, #tpu.memory_space<vmem>>, vector<1x16x384xf32>
    %1 = vector.shape_cast %0 : vector<1x16x384xf32> to vector<16x384xf32>
    %c1 = arith.constant 1 : index
    %c0_2 = arith.constant 0 : index
    %c0_3 = arith.constant 0 : index
    %2 = vector.load %arg0[%c1, %c0_2, %c0_3] : memref<2x16x384xf32, #tpu.memory_space<vmem>>, vector<1x16x384xf32>
    %3 = vector.shape_cast %2 : vector<1x16x384xf32> to vector<16x384xf32>
    %4 = arith.addf %1, %3 : vector<16x384xf32>
    %5 = arith.truncf %4 : vector<16x384xf32> to vector<16x384xbf16>
    %c0_4 = arith.constant 0 : index
    %c0_5 = arith.constant 0 : index
    %6 = vector.load %arg2[%c0_4, %c0_5] : memref<8x128xf32, #tpu.memory_space<vmem>>, vector<8x128xf32>
    %7 = vector.extract_strided_slice %6 {offsets = [0, 0], sizes = [1, 128], strides = [1, 1]} : vector<8x128xf32> to vector<1x128xf32>
    %8 = vector.extract_strided_slice %6 {offsets = [1, 0], sizes = [1, 128], strides = [1, 1]} : vector<8x128xf32> to vector<1x128xf32>
    %9 = vector.extract_strided_slice %6 {offsets = [2, 0], sizes = [1, 128], strides = [1, 1]} : vector<8x128xf32> to vector<1x128xf32>
    %10 = vector.extract_strided_slice %6 {offsets = [3, 0], sizes = [1, 128], strides = [1, 1]} : vector<8x128xf32> to vector<1x128xf32>
    %11 = vector.extract_strided_slice %6 {offsets = [4, 0], sizes = [1, 128], strides = [1, 1]} : vector<8x128xf32> to vector<1x128xf32>
    %c0_6 = arith.constant 0 : index
    %c0_7 = arith.constant 0 : index
    %12 = vector.load %arg1[%c0_6, %c0_7] : memref<640x128xbf16, #tpu.memory_space<vmem>>, vector<384x128xbf16>
    %c384 = arith.constant 384 : index
    %c0_8 = arith.constant 0 : index
    %13 = vector.load %arg1[%c384, %c0_8] : memref<640x128xbf16, #tpu.memory_space<vmem>>, vector<128x128xbf16>
    %c512 = arith.constant 512 : index
    %c0_9 = arith.constant 0 : index
    %14 = vector.load %arg1[%c512, %c0_9] : memref<640x128xbf16, #tpu.memory_space<vmem>>, vector<128x128xbf16>
    %cst = arith.constant dense<0.000000e+00> : vector<16x128xf32>
    %15 = tpu.matmul %5, %12, %cst {dimension_numbers = #tpu.dot_dimension_numbers<[1], [0], [0], [1], [0, 0, 1, 1], [], []>} : vector<16x384xbf16>, vector<384x128xbf16>, vector<16x128xf32> -> vector<16x128xf32>
    %cst_10 = arith.constant dense<0.000000e+00> : vector<128xf32>
    %16 = vector.multi_reduction <add>, %15, %cst_10 [0] : vector<16x128xf32> to vector<128xf32>
    %17 = vector.shape_cast %16 : vector<128xf32> to vector<1x128xf32>
    %cst_11 = arith.constant 1.600000e+01 : f32
    %18 = vector.broadcast %cst_11 : f32 to vector<1x128xf32>
    %19 = arith.divf %17, %18 : vector<1x128xf32>
    %20 = arith.mulf %15, %15 : vector<16x128xf32>
    %cst_12 = arith.constant dense<0.000000e+00> : vector<128xf32>
    %21 = vector.multi_reduction <add>, %20, %cst_12 [0] : vector<16x128xf32> to vector<128xf32>
    %22 = vector.shape_cast %21 : vector<128xf32> to vector<1x128xf32>
    %cst_13 = arith.constant 1.600000e+01 : f32
    %23 = vector.broadcast %cst_13 : f32 to vector<1x128xf32>
    %24 = arith.divf %22, %23 : vector<1x128xf32>
    %25 = arith.mulf %19, %19 : vector<1x128xf32>
    %26 = arith.subf %24, %25 : vector<1x128xf32>
    %cst_14 = arith.constant 0.000000e+00 : f32
    %27 = vector.broadcast %cst_14 : f32 to vector<1x128xf32>
    %28 = arith.maximumf %26, %27 : vector<1x128xf32>
    %cst_15 = arith.constant 9.99999974E-6 : f32
    %29 = vector.broadcast %cst_15 : f32 to vector<1x128xf32>
    %30 = arith.addf %28, %29 : vector<1x128xf32>
    %31 = math.rsqrt %30 : vector<1x128xf32>
    %32 = arith.mulf %7, %31 : vector<1x128xf32>
    %33 = arith.mulf %19, %32 : vector<1x128xf32>
    %34 = arith.subf %8, %33 : vector<1x128xf32>
    %35 = vector.broadcast %32 : vector<1x128xf32> to vector<16x128xf32>
    %36 = arith.mulf %15, %35 : vector<16x128xf32>
    %37 = vector.broadcast %34 : vector<1x128xf32> to vector<16x128xf32>
    %38 = arith.addf %36, %37 : vector<16x128xf32>
    %cst_16 = arith.constant 0.000000e+00 : f32
    %39 = vector.broadcast %cst_16 : f32 to vector<16x128xf32>
    %40 = arith.maximumf %38, %39 : vector<16x128xf32>
    %41 = arith.truncf %40 : vector<16x128xf32> to vector<16x128xbf16>
    %cst_17 = arith.constant dense<0.000000e+00> : vector<16x128xf32>
    %42 = tpu.matmul %41, %13, %cst_17 {dimension_numbers = #tpu.dot_dimension_numbers<[1], [0], [0], [1], [0, 0, 1, 1], [], []>} : vector<16x128xbf16>, vector<128x128xbf16>, vector<16x128xf32> -> vector<16x128xf32>
    %cst_18 = arith.constant dense<0.000000e+00> : vector<128xf32>
    %43 = vector.multi_reduction <add>, %42, %cst_18 [0] : vector<16x128xf32> to vector<128xf32>
    %44 = vector.shape_cast %43 : vector<128xf32> to vector<1x128xf32>
    %cst_19 = arith.constant 1.600000e+01 : f32
    %45 = vector.broadcast %cst_19 : f32 to vector<1x128xf32>
    %46 = arith.divf %44, %45 : vector<1x128xf32>
    %47 = arith.mulf %42, %42 : vector<16x128xf32>
    %cst_20 = arith.constant dense<0.000000e+00> : vector<128xf32>
    %48 = vector.multi_reduction <add>, %47, %cst_20 [0] : vector<16x128xf32> to vector<128xf32>
    %49 = vector.shape_cast %48 : vector<128xf32> to vector<1x128xf32>
    %cst_21 = arith.constant 1.600000e+01 : f32
    %50 = vector.broadcast %cst_21 : f32 to vector<1x128xf32>
    %51 = arith.divf %49, %50 : vector<1x128xf32>
    %52 = arith.mulf %46, %46 : vector<1x128xf32>
    %53 = arith.subf %51, %52 : vector<1x128xf32>
    %cst_22 = arith.constant 0.000000e+00 : f32
    %54 = vector.broadcast %cst_22 : f32 to vector<1x128xf32>
    %55 = arith.maximumf %53, %54 : vector<1x128xf32>
    %cst_23 = arith.constant 9.99999974E-6 : f32
    %56 = vector.broadcast %cst_23 : f32 to vector<1x128xf32>
    %57 = arith.addf %55, %56 : vector<1x128xf32>
    %58 = math.rsqrt %57 : vector<1x128xf32>
    %59 = arith.mulf %9, %58 : vector<1x128xf32>
    %60 = arith.mulf %46, %59 : vector<1x128xf32>
    %61 = arith.subf %10, %60 : vector<1x128xf32>
    %62 = vector.broadcast %59 : vector<1x128xf32> to vector<16x128xf32>
    %63 = arith.mulf %42, %62 : vector<16x128xf32>
    %64 = vector.broadcast %61 : vector<1x128xf32> to vector<16x128xf32>
    %65 = arith.addf %63, %64 : vector<16x128xf32>
    %cst_24 = arith.constant 0.000000e+00 : f32
    %66 = vector.broadcast %cst_24 : f32 to vector<16x128xf32>
    %67 = arith.maximumf %65, %66 : vector<16x128xf32>
    %68 = arith.truncf %67 : vector<16x128xf32> to vector<16x128xbf16>
    %cst_25 = arith.constant dense<0.000000e+00> : vector<16x128xf32>
    %69 = tpu.matmul %68, %14, %cst_25 {dimension_numbers = #tpu.dot_dimension_numbers<[1], [0], [0], [1], [0, 0, 1, 1], [], []>} : vector<16x128xbf16>, vector<128x128xbf16>, vector<16x128xf32> -> vector<16x128xf32>
    %70 = vector.broadcast %11 : vector<1x128xf32> to vector<16x128xf32>
    %71 = arith.addf %69, %70 : vector<16x128xf32>
    %c0_26 = arith.constant 0 : index
    %c0_27 = arith.constant 0 : index
    %72 = vector.load %arg3[%c0_26, %c0_27] : memref<16x128xf32, #tpu.memory_space<vmem>>, vector<16x128xf32>
    tpu.vector_store %arg3[%c0_26, %c0_27], %71 {strides = array<i32>} : memref<16x128xf32, #tpu.memory_space<vmem>>, vector<16x128xf32>,
    return
  }
}

</mosaic_0001>

<bundles_post_ra>
// kernel: tpu_custom_call.1
= control target key start
LH: loop header
LB: loop body
LE: loop exit
PB: predicated region body
PF: predicated region fallthrough
CT: control target
= control target key end

     0   :  { %8 = vsyncpa [#allocation3], 0  ;;  %s978_s0 = inlined_call_operand.hbm [shape: f32[2,16,384], index: 0, kind: input, shape index: {}]   ;;  %s979_s1 = inlined_call_operand.hbm [shape: bf16[640,128], index: 1, kind: input, shape index: {}]   ;;  %s980_s2 = inlined_call_operand.hbm [shape: f32[8,128], index: 2, kind: input, shape index: {}]   ;;  %s981_s3 = inlined_call_operand.hbm [shape: f32[16,128], index: 3, kind: output, shape index: {}]  }
   0x1   :  { %9 = vsyncpa [#allocation6], 0  ;;  %s28_s14 = sshll.u32 %s979_s1, 4  ;;  %s29_s14 = int_to_ptr.hbm [resolvable:$true] %s28_s14 }
   0x2   :  { %10 = vsyncpa [#allocation4], 0  ;;  %s916_s15 = smov [#allocation5]   ;;  %s15_s19 = sshll.u32 %s978_s0, 4  ;;  %s16_s19 = int_to_ptr.hbm [resolvable:$true] %s15_s19 }
   0x3   :  { %s30_s16 = sshll.u32 %s916_s15, 4  ;;  %s917_s20 = smov 64   ;;  %s31_s16 = int_to_ptr.vmem [resolvable:$true] %s30_s16 }
   0x4   :  { %s918_s21 = smov 4   ;;  %s919_s22 = smov [#allocation2]  }
   0x5   :  { %36 = dma.hbm_to_vmem [thread:$0]  %s29_s14, 5120, %s31_s16, [#allocation6], %s917_s20, %s917_s20, %s918_s21  }
   0x6   :  { %s17_s23 = sshll.u32 %s919_s22, 4  ;;  %s920_s24 = smov 384   ;;  %s18_s23 = int_to_ptr.vmem [resolvable:$true] %s17_s23 }
   0x7   :  { %s921_s25 = smov 24   ;;  %s42_s27 = sshll.u32 %s980_s2, 4  ;;  %s43_s27 = int_to_ptr.hbm [resolvable:$true] %s42_s27 }
   0x8   :  { %23 = dma.hbm_to_vmem [thread:$0]  %s16_s19, 1536, %s18_s23, [#allocation3], %s920_s24, %s920_s24, %s921_s25  }
   0x9   :  { %s922_s28 = smov [#allocation7]  }
   0xa   :  { %s44_s29 = sshll.u32 %s922_s28, 4  ;;  %s45_s29 = int_to_ptr.vmem [resolvable:$true] %s44_s29 }
   0xb   :  { %47 = dma.hbm_to_vmem [thread:$0]  %s43_s27, 128, %s45_s29, [#allocation6]  }
   0xc   :  { %910 = dma.done.wait [#allocation3], 1536  }
   0xd   :  { %911 = vsyncadd [#allocation3], 4294965760 }
   0xe   :  { %912 = dma.done.wait [#allocation6], 5248  }
   0xf   :  { %913 = vsyncadd [#allocation6], 4294962048  ;;  %v764_v0 = vld [vmem:[#allocation5 + $0x38] sm:$0xff]  ;;  %v763_v3 = vld [vmem:[#allocation5 + $0x30] sm:$0xff]  ;;  %v923_v47 = vmov 16.0   ;;  %s924_s0 = smov [#allocation8]  }
  0x10   :  { %v772_v1 = vld [vmem:[#allocation5 + $0x78] sm:$0xff]  ;;  %307 = vmatpush.bf16.msra.mxu0 %v764_v0  ;;  %v771_v4 = vld [vmem:[#allocation5 + $0x70] sm:$0xff]  ;;  %v762_v6 = vld [vmem:[#allocation5 + $0x28] sm:$0xff]  ;;  %808 = vrcp.f32 %v923_v47  ;;  %s581_s2 = sshll.u32 %s924_s0, 4  ;;  %s583_s5 = sshll.u32 %s981_s3, 4  ;;  %s582_s2 = int_to_ptr.vmem [resolvable:$true] %s581_s2  ;;  %s584_s5 = int_to_ptr.hbm [resolvable:$true] %s583_s5 }
  0x11   :  { %v780_v2 = vld [vmem:[#allocation5 + $0xb8] sm:$0xff]  ;;  %321 = vmatpush.bf16.msra.mxu1 %v772_v1  ;;  %v779_v5 = vld [vmem:[#allocation5 + $0xb0] sm:$0xff]  ;;  %v770_v7 = vld [vmem:[#allocation5 + $0x68] sm:$0xff]  ;;  %s925_s6 = smov 128   ;;  %s926_s7 = smov 8  }
  0x12   :  { %335 = vmatpush.bf16.msra.mxu2 %v780_v2  ;;  %v778_v8 = vld [vmem:[#allocation5 + $0xa8] sm:$0xff]  ;;  %v761_v9 = vld [vmem:[#allocation5 + $0x20] sm:$0xff]  ;;  %v760_v12 = vld [vmem:[#allocation5 + $0x18] sm:$0xff] }
  0x13   :  { %v769_v10 = vld [vmem:[#allocation5 + $0x60] sm:$0xff]  ;;  %v768_v13 = vld [vmem:[#allocation5 + $0x58] sm:$0xff]  ;;  %v759_v15 = vld [vmem:[#allocation5 + $0x10] sm:$0xff] }
  0x14   :  { %308 = vmatpush.bf16.msra.mxu0 %v763_v3  ;;  %v777_v11 = vld [vmem:[#allocation5 + $0xa0] sm:$0xff]  ;;  %v776_v14 = vld [vmem:[#allocation5 + $0x98] sm:$0xff]  ;;  %v767_v16 = vld [vmem:[#allocation5 + $0x50] sm:$0xff] }
  0x15   :  { %322 = vmatpush.bf16.msra.mxu1 %v771_v4  ;;  %v775_v17 = vld [vmem:[#allocation5 + $0x90] sm:$0xff]  ;;  %v758_v18 = vld [vmem:[#allocation5 + $0x8] sm:$0xff]  ;;  %v60_v20 = vld [vmem:[#allocation2] sm:$0xff] }
  0x16   :  { %336 = vmatpush.bf16.msra.mxu2 %v779_v5  ;;  %v766_v19 = vld [vmem:[#allocation5 + $0x48] sm:$0xff]  ;;  %v63_v21 = vld [vmem:[#allocation2 + $0x18] sm:$0xff]  ;;  %v67_v22 = vld [vmem:[#allocation2 + $0x30] sm:$0xff]  ;;  %v809_v49 = vpop.eup %808 }
  0x17   :  { %v774_v23 = vld [vmem:[#allocation5 + $0x88] sm:$0xff]  ;;  %v64_v26 = vld [vmem:[#allocation2 + $0x20] sm:$0xff]  ;;  %v68_v27 = vld [vmem:[#allocation2 + $0x38] sm:$0xff]  ;;  %v73_v33 = vadd.f32 %v67_v22, %v60_v20  ;;  %v357_v54 = vmul.f32 16.0, %v809_v49  ;;  %vm361_vm0 = vweird.f32 %v809_v49 }
  0x18   :  { %309 = vmatpush.bf16.msra.mxu0 %v762_v6  ;;  %v70_v24 = vld [vmem:[#allocation2 + $0x48] sm:$0xff]  ;;  %v71_v28 = vld [vmem:[#allocation2 + $0x50] sm:$0xff]  ;;  %v69_v31 = vld [vmem:[#allocation2 + $0x40] sm:$0xff] }
  0x19   :  { %323 = vmatpush.bf16.msra.mxu1 %v770_v7  ;;  %v61_v25 = vld [vmem:[#allocation2 + $0x8] sm:$0xff]  ;;  %v62_v29 = vld [vmem:[#allocation2 + $0x10] sm:$0xff]  ;;  %v72_v32 = vld [vmem:[#allocation2 + $0x58] sm:$0xff]  ;;  %v76_v34 = vadd.f32 %v70_v24, %v63_v21  ;;  %v77_v36 = vadd.f32 %v71_v28, %v64_v26  ;;  %v358_v60 = vsub.f32 1.0, %v357_v54 }
  0x1a   :  { %337 = vmatpush.bf16.msra.mxu2 %v778_v8  ;;  %v65_v30 = vld [vmem:[#allocation2 + $0x28] sm:$0xff]  ;;  %v74_v35 = vadd.f32 %v68_v27, %v61_v25  ;;  %v757_v37 = vld [vmem:[#allocation5] sm:$0xff]  ;;  %v75_v39 = vadd.f32 %v69_v31, %v62_v29  ;;  %v788_v53 = vld [vmem:[#allocation5 + $0xf8] sm:$0xff] }
  0x1b   :  { %v765_v38 = vld [vmem:[#allocation5 + $0x40] sm:$0xff]  ;;  %v78_v40 = vadd.f32 %v72_v32, %v65_v30  ;;  %v79_v42 = vpack.c.bf16 %v76_v34, %v73_v33  ;;  %451 = vmatpush.bf16.msra.mxu3 %v788_v53  ;;  %v787_v58 = vld [vmem:[#allocation5 + $0xf0] sm:$0xff]  ;;  %v786_v0 = vld [vmem:[#allocation5 + $0xe8] sm:$0xff]  ;;  %v359_v3 = vmul.f32 %v809_v49, %v358_v60 }
  0x1c   :  { %310 = vmatpush.bf16.msra.mxu0 %v761_v9  ;;  %v773_v41 = vld [vmem:[#allocation5 + $0x80] sm:$0xff]  ;;  %v80_v43 = vpack.c.bf16 %v77_v36, %v74_v35  ;;  %v782_v21 = vld [vmem:[#allocation5 + $0xc8] sm:$0xff] }
  0x1d   :  { %324 = vmatpush.bf16.msra.mxu1 %v769_v10  ;;  %v81_v44 = vpack.c.bf16 %v78_v40, %v75_v39  ;;  %v785_v6 = vld [vmem:[#allocation5 + $0xe0] sm:$0xff]  ;;  %v360_v9 = vadd.f32 %v809_v49, %v359_v3 }
  0x1e   :  { %338 = vmatpush.bf16.msra.mxu2 %v777_v11  ;;  %v781_v25 = vld [vmem:[#allocation5 + $0xc0] sm:$0xff] }
  0x1f   :  { %452 = vmatpush.bf16.msra.mxu3 %v787_v58  ;;  %v965_v33 = vld [vmem:[#allocation7] sm:$0xff] }
  0x20   :  { %311 = vmatpush.bf16.msra.mxu0 %v760_v12  ;;  %v784_v12 = vld [vmem:[#allocation5 + $0xd8] sm:$0xff] }
  0x21   :  { %325 = vmatpush.bf16.msra.mxu1 %v768_v13 }
  0x22   :  { %339 = vmatpush.bf16.msra.mxu2 %v776_v14 }
  0x23   :  { %453 = vmatpush.bf16.msra.mxu3 %v786_v0 }
  0x24   :  { %312 = vmatpush.bf16.msra.mxu0 %v759_v15  ;;  %v961_v15 = vsel %vm361_vm0, %v809_v49, %v360_v9 }
  0x25   :  { %326 = vmatpush.bf16.msra.mxu1 %v767_v16 }
  0x26   :  { %340 = vmatpush.bf16.msra.mxu2 %v775_v17 }
  0x27   :  { %454 = vmatpush.bf16.msra.mxu3 %v785_v6 }
  0x28   :  { %313 = vmatpush.bf16.msra.mxu0 %v758_v18  ;;  %v783_v18 = vld [vmem:[#allocation5 + $0xd0] sm:$0xff] }
  0x29   :  { %327 = vmatpush.bf16.msra.mxu1 %v766_v19 }
  0x2a   :  { %341 = vmatpush.bf16.msra.mxu2 %v774_v23 }
  0x2b   :  { %455 = vmatpush.bf16.msra.mxu3 %v784_v12  ;;  %v790_v12 = vld [vmem:[#allocation5 + $0x108] sm:$0xff] }
  0x2c   :  { %314 = vmatpush.bf16.msra.mxu0 %v757_v37 }
  0x2d   :  { %328 = vmatpush.bf16.msra.mxu1 %v765_v38 }
  0x2e   :  { %342 = vmatpush.bf16.msra.mxu2 %v773_v41 }
  0x2f   :  { %315 = vmatmul.bf16.vlgmr.msra.gmra.mxu0 %v79_v42  ;;  %456 = vmatpush.bf16.msra.mxu3 %v783_v18 }
  0x30   :  { %329 = vmatmul.bf16.vlgmr.msra.gmra.mxu1 %v80_v43 }
  0x31   :  { %343 = vmatmul.bf16.vlgmr.msra.gmra.mxu2 %v81_v44 }
  0x33   :  { %457 = vmatpush.bf16.msra.mxu3 %v782_v21 }
  0x37   :  { %458 = vmatpush.bf16.msra.mxu3 %v781_v25 }
  0xac   :  { %v316_v45 = vpop.f32.mrf.mxu0 }
  0xad   :  { %v330_v46 = vpop.f32.mrf.mxu1 }
  0xae   :  { %v331_v50 = vadd.f32 %v330_v46, %v316_v45 }
  0xb4   :  { %v344_v48 = vpop.f32.mrf.mxu2  ;;  %v318_v51 = vpop.f32.mrf.mxu0 }
  0xb5   :  { %v332_v52 = vpop.f32.mrf.mxu1  ;;  %v956_v55 = vadd.f32 %v344_v48, %v331_v50  ;;  %v796_v50 = vld [vmem:[#allocation5 + $0x138] sm:$0xff] }
  0xb6   :  { %v333_v56 = vadd.f32 %v332_v52, %v318_v51  ;;  %561 = vmatpush.bf16.msrb.mxu0 %v796_v50  ;;  %v795_v51 = vld [vmem:[#allocation5 + $0x130] sm:$0xff] }
  0xb7   :  { %v364_v61 = vmul.f32 %v956_v55, %v956_v55 }
  0xba   :  { %562 = vmatpush.bf16.msrb.mxu0 %v795_v51 }
  0xbc   :  { %v346_v57 = vpop.f32.mrf.mxu2 }
  0xbd   :  { %v347_v59 = vadd.f32 %v346_v57, %v333_v56  ;;  %v794_v57 = vld [vmem:[#allocation5 + $0x128] sm:$0xff] }
  0xbe   :  { %563 = vmatpush.bf16.msrb.mxu0 %v794_v57 }
  0xbf   :  { %v349_v62 = vadd.f32 %v347_v59, %v956_v55  ;;  %v365_v63 = vmul.f32 %v347_v59, %v347_v59 }
  0xc1   :  { %v350_v1 = vrot.slane %v349_v62, 4  ;;  %v366_v2 = vadd.f32 %v365_v63, %v364_v61  ;;  %v793_v61 = vld [vmem:[#allocation5 + $0x120] sm:$0xff] }
  0xc2   :  { %564 = vmatpush.bf16.msrb.mxu0 %v793_v61 }
  0xc3   :  { %v351_v4 = vadd.f32 %v350_v1, %v349_v62  ;;  %v367_v5 = vrot.slane %v366_v2, 4 }
  0xc5   :  { %v352_v7 = vrot.slane %v351_v4, 2  ;;  %v368_v8 = vadd.f32 %v367_v5, %v366_v2  ;;  %v792_v2 = vld [vmem:[#allocation5 + $0x118] sm:$0xff] }
  0xc6   :  { %565 = vmatpush.bf16.msrb.mxu0 %v792_v2 }
  0xc7   :  { %v353_v10 = vadd.f32 %v352_v7, %v351_v4  ;;  %v369_v11 = vrot.slane %v368_v8, 2  ;;  %v791_v7 = vld [vmem:[#allocation5 + $0x110] sm:$0xff] }
  0xc9   :  { %v354_v13 = vrot.slane %v353_v10, 1  ;;  %v370_v14 = vadd.f32 %v369_v11, %v368_v8 }
  0xca   :  { %566 = vmatpush.bf16.msrb.mxu0 %v791_v7 }
  0xcb   :  { %v355_v16 = vadd.f32 %v354_v13, %v353_v10  ;;  %v371_v17 = vrot.slane %v370_v14, 1 }
  0xcd   :  { %v363_v19 = vmul.f32 %v961_v15, %v355_v16  ;;  %v372_v20 = vadd.f32 %v371_v17, %v370_v14  ;;  %v789_v16 = vld [vmem:[#allocation5 + $0x100] sm:$0xff] }
  0xce   :  { %567 = vmatpush.bf16.msrb.mxu0 %v790_v12 }
  0xcf   :  { %v373_v22 = vmul.f32 %v372_v20, %v961_v15  ;;  %v374_v23 = vmul.f32 %v363_v19, %v363_v19 }
  0xd1   :  { %v375_v24 = vsub.f32 %v373_v22, %v374_v23 }
  0xd2   :  { %568 = vmatpush.bf16.msrb.mxu0 %v789_v16 }
  0xd3   :  { %v376_v26 = vmax.f32 %v375_v24, 0.0 }
  0xd5   :  { %v377_v27 = vadd.f32 1e-05, %v376_v26 }
  0xd7   :  { %810 = vrsqrt.f32 %v377_v27  ;;  %vm384_vm2 = vweird.f32 %v377_v27 }
  0xdd   :  { %v811_v28 = vpop.eup %810 }
  0xde   :  { %v379_v29 = vmul.f32 %v811_v28, %v377_v27  ;;  %vm385_vm1 = vweird.f32 %v811_v28 }
  0xdf   :  { %vm386_vm3 = vmor %vm384_vm2, %vm385_vm1 }
  0xe0   :  { %v380_v30 = vmul.f32 %v811_v28, %v379_v29 }
  0xe2   :  { %v381_v31 = vmul.f32 0.5, %v380_v30 }
  0xe4   :  { %v382_v32 = vsub.f32 1.5, %v381_v31 }
  0xe6   :  { %v383_v34 = vmul.f32 %v811_v28, %v382_v32 }
  0xe8   :  { %v387_v35 = vsel %vm386_vm3, %v811_v28, %v383_v34 }
  0xe9   :  { %v388_v36 = vmul.f32 %v387_v35, %v965_v33 }
  0xeb   :  { %v389_v37 = vmul.f32 %v388_v36, %v363_v19  ;;  %v394_v38 = vperm.slane %v388_v36, 0 }
  0xed   :  { %v391_v39 = vrot.slane %v389_v37, 7  ;;  %v396_v41 = vmul.f32 %v394_v38, %v347_v59  ;;  %v395_v42 = vmul.f32 %v394_v38, %v956_v55  ;;  %v512_v38 = vperm.slane %v965_v33, 4 }
  0xef   :  { %v393_v40 = vsub.f32 %v965_v33, %v391_v39 }
  0xf1   :  { %v397_v43 = vperm.slane %v393_v40, 1 }
  0xf3   :  { %v398_v44 = vadd.f32 %v397_v43, %v395_v42  ;;  %v399_v45 = vadd.f32 %v397_v43, %v396_v41 }
  0xf5   :  { %v400_v46 = vmax.f32 %v398_v44, 0.0  ;;  %v401_v47 = vmax.f32 %v399_v45, 0.0 }
  0xf7   :  { %v402_v48 = vpack.c.bf16 %v401_v47, %v400_v46 }
  0xf9   :  { %459 = vmatmul.bf16.vlgmr.msra.gmra.mxu3 %v402_v48 }
 0x17c   :  { %v460_v49 = vpop.f32.mrf.mxu3 }
 0x17d   :  { %v473_v53 = vmul.f32 %v460_v49, %v460_v49 }
 0x184   :  { %v462_v52 = vpop.f32.mrf.mxu3 }
 0x185   :  { %v465_v54 = vadd.f32 %v462_v52, %v460_v49  ;;  %v474_v56 = vmul.f32 %v462_v52, %v462_v52 }
 0x187   :  { %v466_v58 = vrot.slane %v465_v54, 4  ;;  %v475_v59 = vadd.f32 %v474_v56, %v473_v53 }
 0x189   :  { %v467_v55 = vadd.f32 %v466_v58, %v465_v54  ;;  %v476_v60 = vrot.slane %v475_v59, 4 }
 0x18b   :  { %v468_v62 = vrot.slane %v467_v55, 2  ;;  %v477_v63 = vadd.f32 %v476_v60, %v475_v59 }
 0x18d   :  { %v469_v0 = vadd.f32 %v468_v62, %v467_v55  ;;  %v478_v1 = vrot.slane %v477_v63, 2 }
 0x18f   :  { %v470_v3 = vrot.slane %v469_v0, 1  ;;  %v479_v4 = vadd.f32 %v478_v1, %v477_v63 }
 0x191   :  { %v471_v5 = vadd.f32 %v470_v3, %v469_v0  ;;  %v480_v6 = vrot.slane %v479_v4, 1 }
 0x193   :  { %v472_v8 = vmul.f32 %v471_v5, %v961_v15  ;;  %v481_v9 = vadd.f32 %v480_v6, %v479_v4 }
 0x195   :  { %v482_v10 = vmul.f32 %v481_v9, %v961_v15  ;;  %v483_v11 = vmul.f32 %v472_v8, %v472_v8 }
 0x197   :  { %v484_v13 = vsub.f32 %v482_v10, %v483_v11 }
 0x199   :  { %v485_v14 = vmax.f32 %v484_v13, 0.0 }
 0x19b   :  { %v486_v17 = vadd.f32 1e-05, %v485_v14 }
 0x19d   :  { %812 = vrsqrt.f32 %v486_v17  ;;  %vm493_vm5 = vweird.f32 %v486_v17 }
 0x1a3   :  { %v813_v18 = vpop.eup %812 }
 0x1a4   :  { %v488_v19 = vmul.f32 %v813_v18, %v486_v17  ;;  %vm494_vm4 = vweird.f32 %v813_v18 }
 0x1a5   :  { %vm495_vm6 = vmor %vm493_vm5, %vm494_vm4 }
 0x1a6   :  { %v489_v20 = vmul.f32 %v813_v18, %v488_v19 }
 0x1a8   :  { %v490_v21 = vmul.f32 0.5, %v489_v20 }
 0x1aa   :  { %v491_v22 = vsub.f32 1.5, %v490_v21 }
 0x1ac   :  { %v492_v23 = vmul.f32 %v813_v18, %v491_v22 }
 0x1ae   :  { %v496_v24 = vsel %vm495_vm6, %v813_v18, %v492_v23 }
 0x1af   :  { %v497_v15 = vmul.f32 %v496_v24, %v965_v33 }
 0x1b1   :  { %v498_v25 = vmul.f32 %v497_v15, %v472_v8  ;;  %v503_v27 = vperm.slane %v497_v15, 2 }
 0x1b3   :  { %v500_v26 = vrot.slane %v498_v25, 7  ;;  %v504_v29 = vmul.f32 %v503_v27, %v460_v49  ;;  %v505_v30 = vmul.f32 %v503_v27, %v462_v52 }
 0x1b5   :  { %v502_v28 = vsub.f32 %v965_v33, %v500_v26 }
 0x1b7   :  { %v506_v31 = vperm.slane %v502_v28, 3 }
 0x1b9   :  { %v508_v32 = vadd.f32 %v506_v31, %v505_v30  ;;  %v507_v34 = vadd.f32 %v506_v31, %v504_v29 }
 0x1bb   :  { %v510_v35 = vmax.f32 %v508_v32, 0.0  ;;  %v509_v36 = vmax.f32 %v507_v34, 0.0 }
 0x1bd   :  { %v511_v37 = vpack.c.bf16 %v510_v35, %v509_v36 }
 0x1bf   :  { %569 = vmatmul.bf16.vlgmr.msrb.gmra.mxu0 %v511_v37 }
 0x23c   :  { %v570_v39 = vpop.f32.mrf.mxu0 }
 0x23d   :  { %v571_v40 = vadd.f32 %v570_v39, %v512_v38 }
 0x23f   :  { %575 = vst [vmem:[#allocation8] sm:$0xff] %v571_v40 }
 0x244   :  { %v572_v41 = vpop.f32.mrf.mxu0 }
 0x245   :  { %v573_v42 = vadd.f32 %v572_v41, %v512_v38 }
 0x247   :  { %576 = vst [vmem:[#allocation8 + $0x8] sm:$0xff] %v573_v42 }
 0x248   :  { %589 = dma.vmem_to_hbm [thread:$0]  %s582_s2, 256, %s584_s5, [#allocation4], %s925_s6, %s925_s6, %s926_s7  }
 0x249   :  { %914 = dma.done.wait [#allocation4], 256  }
 0x24a   :  { %915 = vsyncadd [#allocation4], 4294967040 }
 0x24b   :  { %594 = vsyncpa [#allocation3], 1 }
 0x24c   :  { %595 = vsyncpa [#allocation6], 1 }
 0x24d   :  { %596 = vsyncpa [#allocation4], 1 }

</bundles_post_ra>
